<compile_context>
chip_gen: v7x
topology: tpu7x:2x2x1
jax: 0.10.0
libtpu: 0.0.40
codegen_flags: <defaults>
</compile_context>

<pallas_src>
import numpy as np
import jax
import jax.numpy as jnp
from jax.experimental import pallas as pl
from jax.experimental.pallas import tpu as pltpu

N_JOINTS = 24
NPOSE = N_JOINTS * 6            # 144
N_HEADS = NPOSE + 10 + 3        # 157 (pose + shape + cam)
N_PAD = 256                     # lane-dense output width (multiple of 128)
ROT_W = 9 * N_JOINTS            # 216 (b1xyz, b2xyz, b3xyz, 24 joints each)


# ----------------------------------------------------------------------------- utils
def _full_spec(shape):
    nd = len(shape)
    return pl.BlockSpec(shape, lambda i, _nd=nd: (0,) * _nd)


def build_pool_matrix(C, H, W, out_size=8):
    """Dense matrix M s.t. (B, C*H*W) @ M == AdaptiveAvgPool2d(out_size) flattened."""
    M = np.zeros((C * H * W, C * out_size * out_size), dtype=np.float64)
    for oh in range(out_size):
        h0 = (oh * H) // out_size
        h1 = -(-((oh + 1) * H) // out_size)  # ceil
        for ow in range(out_size):
            w0 = (ow * W) // out_size
            w1 = -(-((ow + 1) * W) // out_size)
            inv = 1.0 / float((h1 - h0) * (w1 - w0))
            for c in range(C):
                col = c * out_size * out_size + oh * out_size + ow
                for h in range(h0, h1):
                    for w in range(w0, w1):
                        M[c * H * W + h * W + w, col] = inv
    return M


def build_grouped_perm(n_joints=N_JOINTS):
    """Column permutation: grouped[g*24 + j] = original[6*j + {2g if g<3 else 2(g-3)+1}].

    Grouped order is [a1x(all joints), a1y, a1z, a2x, a2y, a2z]."""
    perm = []
    for g in range(6):
        for j in range(n_joints):
            if g < 3:
                perm.append(6 * j + 2 * g)
            else:
                perm.append(6 * j + 2 * (g - 3) + 1)
    return np.asarray(perm, np.int64)


def fuse_params(pool_mat_np, wp, bp, ws, bs, wc, bc, perm):
    """Fold pool matrix + head weights/biases into one padded weight / bias (f64 math)."""
    wp_g = np.asarray(wp, np.float64)[:, perm]
    bp_g = np.asarray(bp, np.float64)[:, perm]
    w_heads = np.concatenate(
        [wp_g, np.asarray(ws, np.float64), np.asarray(wc, np.float64)], axis=1)   # (192, 157)
    w_fused = pool_mat_np @ w_heads                                               # (768, 157)
    w_fused = np.pad(w_fused, ((0, 0), (0, N_PAD - N_HEADS)))
    b_fused = np.concatenate(
        [bp_g, np.asarray(bs, np.float64), np.asarray(bc, np.float64)], axis=1)   # (1, 157)
    b_fused = np.pad(b_fused, ((0, 0), (0, N_PAD - N_HEADS)))
    return jnp.asarray(w_fused, jnp.float32), jnp.asarray(b_fused, jnp.float32)


# --------------------------------------------- fused kernel: matmul + rot6d -> rotmat
def _fused_kernel(x_ref, w_ref, b_ref, heads_ref, rot_ref):
    # pool + all three heads as one MXU matmul -> lane-dense (B_pad, 256)
    out = jnp.dot(x_ref[...], w_ref[...],
                  preferred_element_type=jnp.float32) + b_ref[...]
    heads_ref[...] = out

    # rot6d -> rotmat on component-grouped pose columns (contiguous 24-wide slices)
    J = N_JOINTS
    a1x = out[:, 0 * J:1 * J]
    a1y = out[:, 1 * J:2 * J]
    a1z = out[:, 2 * J:3 * J]
    a2x = out[:, 3 * J:4 * J]
    a2y = out[:, 4 * J:5 * J]
    a2z = out[:, 5 * J:6 * J]

    eps = 1e-12
    inv1 = 1.0 / jnp.maximum(jnp.sqrt(a1x * a1x + a1y * a1y + a1z * a1z), eps)
    b1x, b1y, b1z = a1x * inv1, a1y * inv1, a1z * inv1          # F.normalize(a1)

    d = b1x * a2x + b1y * a2y + b1z * a2z                       # <b1, a2>
    u2x, u2y, u2z = a2x - d * b1x, a2y - d * b1y, a2z - d * b1z
    inv2 = 1.0 / jnp.maximum(jnp.sqrt(u2x * u2x + u2y * u2y + u2z * u2z), eps)
    b2x, b2y, b2z = u2x * inv2, u2y * inv2, u2z * inv2          # F.normalize(a2 - d*b1)

    b3x = b1y * b2z - b1z * b2y                                 # cross(b1, b2)
    b3y = b1z * b2x - b1x * b2z
    b3z = b1x * b2y - b1y * b2x

    pad = jnp.zeros((out.shape[0], N_PAD - ROT_W), jnp.float32)
    rot_ref[...] = jnp.concatenate(
        [b1x, b1y, b1z, b2x, b2y, b2z, b3x, b3y, b3z, pad], axis=-1)


def fused_forward(x_pad, w_fused, b_fused):
    b_pad_rows = x_pad.shape[0]
    out_shapes = (
        jax.ShapeDtypeStruct((b_pad_rows, N_PAD), jnp.float32),   # heads (pose|shape|cam)
        jax.ShapeDtypeStruct((b_pad_rows, N_PAD), jnp.float32),   # rotmat columns
    )
    return pl.pallas_call(
        _fused_kernel,
        grid=(1,),
        in_specs=[_full_spec(x_pad.shape),
                  _full_spec(w_fused.shape),
                  _full_spec(b_fused.shape)],
        out_specs=tuple(_full_spec(s.shape) for s in out_shapes),
        out_shape=out_shapes,
        compiler_params=pltpu.CompilerParams(
            dimension_semantics=("arbitrary",)),
    )(x_pad, w_fused, b_fused)


# ---------------------------------------------------------------- full forward (glue)
def dummy_model_forward(images, w_fused, b_fused, inv_perm):
    B = images.shape[0]
    x_flat = images.reshape(B, -1).astype(jnp.float32)          # (B, C*H*W)
    b_pad_rows = -(-B // 8) * 8                                 # sublane-align batch
    x_pad = jnp.pad(x_flat, ((0, b_pad_rows - B), (0, 0)))

    heads_out, rot_out = fused_forward(x_pad, w_fused, b_fused)

    pose_grouped = heads_out[:B, :NPOSE]                        # grouped column order
    pred_pose_6d = pose_grouped[:, inv_perm]                    # back to PyTorch order
    pred_shape = heads_out[:B, NPOSE:NPOSE + 10]
    pred_cam = heads_out[:B, NPOSE + 10:NPOSE + 13]

    # rot_out lanes = [b1x b1y b1z | b2x b2y b2z | b3x b3y b3z] x 24 joints each
    rot = rot_out[:B, :ROT_W].reshape(B, 3, 3, N_JOINTS)        # (b, col, row, joint)
    pred_rotmat = jnp.transpose(rot, (0, 3, 2, 1))              # (b, joint, row, col)

    # TODO(synk): smpl_output = self.smpl(rotmat, shape, cam) omitted (needs SMPL data).
    return {
        'pred_pose': pred_rotmat,
        'pred_cam': pred_cam,
        'pred_shape': pred_shape,
        'pred_pose_6d': pred_pose_6d,
    }


# ---------------------------------------------------------------------------- main
if __name__ == "__main__":
    B, C, H, W = 2, 3, 16, 16            # C*8*8 = 192 matches Linear(192, ...)
    npose = NPOSE

    key = jax.random.PRNGKey(0)
    k_img, k1, k2, k3, k4, k5, k6 = jax.random.split(key, 7)
    images = jax.random.normal(k_img, (B, C, H, W), jnp.float32)

    # deterministic parameter init; weights stored as (in, out) = PyTorch weight.T
    wp = jax.random.normal(k1, (192, npose), jnp.float32) * 0.02
    bp = jax.random.normal(k2, (1, npose), jnp.float32) * 0.02
    ws = jax.random.normal(k3, (192, 10), jnp.float32) * 0.02
    bs = jax.random.normal(k4, (1, 10), jnp.float32) * 0.02
    wc = jax.random.normal(k5, (192, 3), jnp.float32) * 0.02
    bc = jax.random.normal(k6, (1, 3), jnp.float32) * 0.02

    pool_mat = build_pool_matrix(C, H, W)            # (768, 192), float64
    perm = build_grouped_perm()
    inv_perm = jnp.asarray(np.argsort(perm), jnp.int32)
    w_fused, b_fused = fuse_params(pool_mat, wp, bp, ws, bs, wc, bc, perm)

    out = dummy_model_forward(images, w_fused, b_fused, inv_perm)
    out = jax.block_until_ready(out)

    # ------------------------- pure-numpy (f64) reference check -------------------------
    imgs64 = np.asarray(images, np.float64)
    feat_ref = imgs64.reshape(B, C, 8, H // 8, 8, W // 8).mean(axis=(3, 5)).reshape(B, -1)
    pose_ref = feat_ref @ np.asarray(wp, np.float64) + np.asarray(bp, np.float64)
    shape_ref = feat_ref @ np.asarray(ws, np.float64) + np.asarray(bs, np.float64)
    cam_ref = feat_ref @ np.asarray(wc, np.float64) + np.asarray(bc, np.float64)

    x6r = pose_ref.reshape(-1, 3, 2)
    a1r, a2r = x6r[..., 0], x6r[..., 1]
    b1r = a1r / np.maximum(np.linalg.norm(a1r, axis=-1, keepdims=True), 1e-12)
    u2r = a2r - np.sum(b1r * a2r, axis=-1, keepdims=True) * b1r
    b2r = u2r / np.maximum(np.linalg.norm(u2r, axis=-1, keepdims=True), 1e-12)
    b3r = np.cross(b1r, b2r)
    rotmat_ref = np.stack([b1r, b2r, b3r], axis=-1).reshape(B, 24, 3, 3)

    assert np.allclose(np.asarray(out['pred_pose_6d']), pose_ref, atol=1e-4, rtol=1e-4)
    assert np.allclose(np.asarray(out['pred_shape']), shape_ref, atol=1e-4, rtol=1e-4)
    assert np.allclose(np.asarray(out['pred_cam']), cam_ref, atol=1e-4, rtol=1e-4)
    assert np.allclose(np.asarray(out['pred_pose']), rotmat_ref, atol=1e-4, rtol=1e-4)

    print("KERNEL_OK")
</pallas_src>

<mosaic_0001>
module attributes {stable_mosaic.version = 11 : i64} {
  func.func @_fused_kernel(%arg0: i32, %arg1: memref<8x768xf32, #tpu.memory_space<vmem>>, %arg2: memref<768x256xf32, #tpu.memory_space<vmem>>, %arg3: memref<1x256xf32, #tpu.memory_space<vmem>>, %arg4: memref<8x256xf32, #tpu.memory_space<vmem>>, %arg5: memref<8x256xf32, #tpu.memory_space<vmem>>) attributes {dimension_semantics = [#tpu.dimension_semantics<arbitrary>], iteration_bounds = array<i64: 1>, scalar_prefetch = 0 : i64, scratch_operands = 0 : i64, tpu.core_type = #tpu.core_type<tc>, window_params = [{pipeline_mode = #tpu.pipeline_mode<synchronous>, transform_indices = @transform_0, window_bounds = array<i64: 8, 768>}, {pipeline_mode = #tpu.pipeline_mode<synchronous>, transform_indices = @transform_1, window_bounds = array<i64: 768, 256>}, {pipeline_mode = #tpu.pipeline_mode<synchronous>, transform_indices = @transform_2, window_bounds = array<i64: 1, 256>}, {pipeline_mode = #tpu.pipeline_mode<synchronous>, transform_indices = @transform_3, window_bounds = array<i64: 8, 256>}, {pipeline_mode = #tpu.pipeline_mode<synchronous>, transform_indices = @transform_4, window_bounds = array<i64: 8, 256>}]} {
    %c0 = arith.constant 0 : index
    %c0_0 = arith.constant 0 : index
    %0 = vector.load %arg1[%c0, %c0_0] : memref<8x768xf32, #tpu.memory_space<vmem>>, vector<8x768xf32>
    %c0_1 = arith.constant 0 : index
    %c0_2 = arith.constant 0 : index
    %1 = vector.load %arg2[%c0_1, %c0_2] : memref<768x256xf32, #tpu.memory_space<vmem>>, vector<768x256xf32>
    %cst = arith.constant dense<0.000000e+00> : vector<8x256xf32>
    %2 = tpu.matmul %0, %1, %cst {dimension_numbers = #tpu.dot_dimension_numbers<[1], [0], [0], [1], [0, 0, 1, 1], [], []>} : vector<8x768xf32>, vector<768x256xf32>, vector<8x256xf32> -> vector<8x256xf32>
    %c0_3 = arith.constant 0 : index
    %c0_4 = arith.constant 0 : index
    %3 = vector.load %arg3[%c0_3, %c0_4] : memref<1x256xf32, #tpu.memory_space<vmem>>, vector<1x256xf32>
    %4 = vector.broadcast %3 : vector<1x256xf32> to vector<8x256xf32>
    %5 = arith.addf %2, %4 : vector<8x256xf32>
    %c0_5 = arith.constant 0 : index
    %c0_6 = arith.constant 0 : index
    %6 = vector.load %arg4[%c0_5, %c0_6] : memref<8x256xf32, #tpu.memory_space<vmem>>, vector<8x256xf32>
    tpu.vector_store %arg4[%c0_5, %c0_6], %5 {strides = array<i32>} : memref<8x256xf32, #tpu.memory_space<vmem>>, vector<8x256xf32>,
    %7 = vector.extract_strided_slice %5 {offsets = [0, 0], sizes = [8, 24], strides = [1, 1]} : vector<8x256xf32> to vector<8x24xf32>
    %8 = vector.extract_strided_slice %5 {offsets = [0, 24], sizes = [8, 24], strides = [1, 1]} : vector<8x256xf32> to vector<8x24xf32>
    %9 = vector.extract_strided_slice %5 {offsets = [0, 48], sizes = [8, 24], strides = [1, 1]} : vector<8x256xf32> to vector<8x24xf32>
    %10 = vector.extract_strided_slice %5 {offsets = [0, 72], sizes = [8, 24], strides = [1, 1]} : vector<8x256xf32> to vector<8x24xf32>
    %11 = vector.extract_strided_slice %5 {offsets = [0, 96], sizes = [8, 24], strides = [1, 1]} : vector<8x256xf32> to vector<8x24xf32>
    %12 = vector.extract_strided_slice %5 {offsets = [0, 120], sizes = [8, 24], strides = [1, 1]} : vector<8x256xf32> to vector<8x24xf32>
    %13 = arith.mulf %7, %7 : vector<8x24xf32>
    %14 = arith.mulf %8, %8 : vector<8x24xf32>
    %15 = arith.addf %13, %14 : vector<8x24xf32>
    %16 = arith.mulf %9, %9 : vector<8x24xf32>
    %17 = arith.addf %15, %16 : vector<8x24xf32>
    %18 = math.sqrt %17 : vector<8x24xf32>
    %cst_7 = arith.constant 9.99999996E-13 : f32
    %19 = vector.broadcast %cst_7 : f32 to vector<8x24xf32>
    %20 = arith.maximumf %18, %19 : vector<8x24xf32>
    %cst_8 = arith.constant 1.000000e+00 : f32
    %21 = vector.broadcast %cst_8 : f32 to vector<8x24xf32>
    %22 = arith.divf %21, %20 : vector<8x24xf32>
    %23 = arith.mulf %7, %22 : vector<8x24xf32>
    %24 = arith.mulf %8, %22 : vector<8x24xf32>
    %25 = arith.mulf %9, %22 : vector<8x24xf32>
    %26 = arith.mulf %23, %10 : vector<8x24xf32>
    %27 = arith.mulf %24, %11 : vector<8x24xf32>
    %28 = arith.addf %26, %27 : vector<8x24xf32>
    %29 = arith.mulf %25, %12 : vector<8x24xf32>
    %30 = arith.addf %28, %29 : vector<8x24xf32>
    %31 = arith.mulf %30, %23 : vector<8x24xf32>
    %32 = arith.subf %10, %31 : vector<8x24xf32>
    %33 = arith.mulf %30, %24 : vector<8x24xf32>
    %34 = arith.subf %11, %33 : vector<8x24xf32>
    %35 = arith.mulf %30, %25 : vector<8x24xf32>
    %36 = arith.subf %12, %35 : vector<8x24xf32>
    %37 = arith.mulf %32, %32 : vector<8x24xf32>
    %38 = arith.mulf %34, %34 : vector<8x24xf32>
    %39 = arith.addf %37, %38 : vector<8x24xf32>
    %40 = arith.mulf %36, %36 : vector<8x24xf32>
    %41 = arith.addf %39, %40 : vector<8x24xf32>
    %42 = math.sqrt %41 : vector<8x24xf32>
    %cst_9 = arith.constant 9.99999996E-13 : f32
    %43 = vector.broadcast %cst_9 : f32 to vector<8x24xf32>
    %44 = arith.maximumf %42, %43 : vector<8x24xf32>
    %cst_10 = arith.constant 1.000000e+00 : f32
    %45 = vector.broadcast %cst_10 : f32 to vector<8x24xf32>
    %46 = arith.divf %45, %44 : vector<8x24xf32>
    %47 = arith.mulf %32, %46 : vector<8x24xf32>
    %48 = arith.mulf %34, %46 : vector<8x24xf32>
    %49 = arith.mulf %36, %46 : vector<8x24xf32>
    %50 = arith.mulf %24, %49 : vector<8x24xf32>
    %51 = arith.mulf %25, %48 : vector<8x24xf32>
    %52 = arith.subf %50, %51 : vector<8x24xf32>
    %53 = arith.mulf %25, %47 : vector<8x24xf32>
    %54 = arith.mulf %23, %49 : vector<8x24xf32>
    %55 = arith.subf %53, %54 : vector<8x24xf32>
    %56 = arith.mulf %23, %48 : vector<8x24xf32>
    %57 = arith.mulf %24, %47 : vector<8x24xf32>
    %58 = arith.subf %56, %57 : vector<8x24xf32>
    %cst_11 = arith.constant 0.000000e+00 : f32
    %59 = vector.broadcast %cst_11 : f32 to vector<8x40xf32>
    %60 = tpu.concatenate %23, %24, %25, %47, %48, %49, %52, %55, %58, %59 in 1 : vector<8x24xf32>, vector<8x24xf32>, vector<8x24xf32>, vector<8x24xf32>, vector<8x24xf32>, vector<8x24xf32>, vector<8x24xf32>, vector<8x24xf32>, vector<8x24xf32>, vector<8x40xf32> -> vector<8x256xf32>
    %c0_12 = arith.constant 0 : index
    %c0_13 = arith.constant 0 : index
    %61 = vector.load %arg5[%c0_12, %c0_13] : memref<8x256xf32, #tpu.memory_space<vmem>>, vector<8x256xf32>
    tpu.vector_store %arg5[%c0_12, %c0_13], %60 {strides = array<i32>} : memref<8x256xf32, #tpu.memory_space<vmem>>, vector<8x256xf32>,
    return
  }
  func.func @transform_0(%arg0: i32) -> (i32, i32) {
    %c0_i32 = arith.constant 0 : i32
    %c0_i32_0 = arith.constant 0 : i32
    %c0_i32_1 = arith.constant 0 : i32
    return %c0_i32, %c0_i32_0 : i32, i32
  }
  func.func @transform_1(%arg0: i32) -> (i32, i32) {
    %c0_i32 = arith.constant 0 : i32
    %c0_i32_0 = arith.constant 0 : i32
    %c0_i32_1 = arith.constant 0 : i32
    return %c0_i32, %c0_i32_0 : i32, i32
  }
  func.func @transform_2(%arg0: i32) -> (i32, i32) {
    %c0_i32 = arith.constant 0 : i32
    %c0_i32_0 = arith.constant 0 : i32
    %c0_i32_1 = arith.constant 0 : i32
    return %c0_i32, %c0_i32_0 : i32, i32
  }
  func.func @transform_3(%arg0: i32) -> (i32, i32) {
    %c0_i32 = arith.constant 0 : i32
    %c0_i32_0 = arith.constant 0 : i32
    %c0_i32_1 = arith.constant 0 : i32
    return %c0_i32, %c0_i32_0 : i32, i32
  }
  func.func @transform_4(%arg0: i32) -> (i32, i32) {
    %c0_i32 = arith.constant 0 : i32
    %c0_i32_0 = arith.constant 0 : i32
    %c0_i32_1 = arith.constant 0 : i32
    return %c0_i32, %c0_i32_0 : i32, i32
  }
}

</mosaic_0001>

<bundles_post_ra>
// kernel: tpu_custom_call.1
= control target key start
LH: loop header
LB: loop body
LE: loop exit
PB: predicated region body
PF: predicated region fallthrough
CT: control target
= control target key end

     0   :  { %10 = vsyncpa [#allocation3], 0  ;;  %s1186_s0 = inlined_call_operand.hbm [shape: f32[8,768], index: 0, kind: input, shape index: {}]   ;;  %s1187_s1 = inlined_call_operand.hbm [shape: f32[768,256], index: 1, kind: input, shape index: {}]   ;;  %s1188_s2 = inlined_call_operand.vmem [shape: f32[1,256], index: 2, kind: input, shape index: {}]   ;;  %s1189_s3 = inlined_call_operand.hbm [shape: f32[8,256], index: 3, kind: output, shape index: {0}]   ;;  %s1190_s4 = inlined_call_operand.hbm [shape: f32[8,256], index: 4, kind: output, shape index: {1}]  }
   0x1   :  { %11 = vsyncpa [#allocation6], 0 }
   0x2   :  { %12 = vsyncpa [#allocation4], 0 }
   0x3   :  { %13 = vsyncpa [#allocation9], 0  ;;  %s1021_s15 = smov [#allocation2]   ;;  %s1022_s17 = smov [#allocation5]  }
   0x4   :  { %s20_s16 = sshll.u32 %s1021_s15, 4  ;;  %s29_s18 = sshll.u32 %s1022_s17, 4  ;;  %s21_s16 = int_to_ptr.vmem [resolvable:$true] %s20_s16  ;;  %s1063_s18 = int_to_ptr.vmem [resolvable:$true] %s29_s18 }
   0x5   :  { %s925_s21 = scalar_lea.hbm %s1186_s0, 768 }
   0x6   :  { %p926_p0 = scmp.ne.s32.totalorder %s1186_s0, %s925_s21  ;;  %p929_p1 = scmp.lt.u32.totalorder %s925_s21, %s1186_s0 }
   0x8   :  { %p931_p2 = pnand %p929_p1, %p926_p0 }
   0xa   :  { %934 = shalt.err (!%p931_p2)
}
   0xb   :  { %s935_s26 = scalar_lea.vmem %s21_s16, 768  ;;  %p940_p4 = scmp.lt.s32.totalorder %s21_s16, %s21_s16 }
   0xc   :  { %p936_p3 = scmp.ne.s32.totalorder %s21_s16, %s935_s26  ;;  %p941_p5 = scmp.lt.s32.totalorder %s935_s26, %s935_s26 }
   0xe   :  { %p942_p6 = por %p941_p5, %p940_p4 }
  0x10   :  { %p943_p7 = pnand %p942_p6, %p936_p3 }
  0x12   :  { %946 = shalt.err (!%p943_p7)
}
  0x13   :  { %23 = dma.hbm_to_vmem [thread:$0]  %s1186_s0, 768, %s21_s16, [#allocation3]  }
  0x14   :  { %s947_s5 = scalar_lea.hbm %s1187_s1, 24576 }
  0x15   :  { %p948_p8 = scmp.ne.s32.totalorder %s1187_s1, %s947_s5  ;;  %p951_p9 = scmp.lt.u32.totalorder %s947_s5, %s1187_s1 }
  0x17   :  { %p953_p10 = pnand %p951_p9, %p948_p8 }
  0x19   :  { %956 = shalt.err (!%p953_p10)
}
  0x1a   :  { %s957_s10 = scalar_lea.vmem %s1063_s18, 24576  ;;  %p962_p12 = scmp.lt.s32.totalorder %s1063_s18, %s1063_s18 }
  0x1b   :  { %p958_p11 = scmp.ne.s32.totalorder %s1063_s18, %s957_s10  ;;  %p963_p13 = scmp.lt.s32.totalorder %s957_s10, %s957_s10 }
  0x1d   :  { %p964_p0 = por %p963_p13, %p962_p12 }
  0x1f   :  { %p965_p1 = pnand %p964_p0, %p958_p11 }
  0x21   :  { %968 = shalt.err (!%p965_p1)
}
  0x22   :  { %s1023_s0 = smov 256   ;;  %s1024_s11 = smov 16  }
  0x23   :  { %35 = dma.hbm_to_vmem [thread:$0]  %s1187_s1, 24576, %s1063_s18, [#allocation6], %s1023_s0, %s1023_s0, %s1024_s11  }
  0x24   :  { %1013 = dma.done.wait [#allocation3], 768  }
  0x25   :  { %1014 = vsyncadd [#allocation3], 4294966528 }
  0x26   :  { %1015 = dma.done.wait [#allocation6], 24576  }
  0x27   :  { %1016 = vsyncadd [#allocation6], 4294942720  ;;  %v115_v0 = vld [vmem:[#allocation5 + $0x208] sm:$0xff]  ;;  %v117_v1 = vld [vmem:[#allocation5 + $0x218] sm:$0xff]  ;;  %s1025_s15 = smov 104   ;;  %s1027_s16 = smov 56  }
  0x28   :  { %v114_v2 = vld [vmem:[#allocation5 + $0x200] sm:$0xff]  ;;  %v766_v3 = vpack.c.bf16 %v117_v1, %v115_v0  ;;  %v116_v4 = vld [vmem:[#allocation5 + $0x210] sm:$0xff]  ;;  %v119_v5 = vld [vmem:[#allocation5 + $0x228] sm:$0xff]  ;;  %s1028_s17 = smov 24   ;;  %s1029_s18 = smov 48   ;;  %vm513_vm2 = vcmask 457728  }
  0x29   :  { %v121_v6 = vld [vmem:[#allocation5 + $0x238] sm:$0xff]  ;;  %v768_v7 = vpack.c.bf16 %v116_v4, %v114_v2  ;;  %v118_v9 = vld [vmem:[#allocation5 + $0x220] sm:$0xff]  ;;  %v120_v10 = vld [vmem:[#allocation5 + $0x230] sm:$0xff]  ;;  %s1030_s19 = smov 96   ;;  %s1031_s20 = smov 120   ;;  %vm564_vm3 = vcmask 654336  }
  0x2a   :  { %v770_v8 = vpack.c.bf16 %v121_v6, %v119_v5  ;;  %v123_v11 = vld [vmem:[#allocation5 + $0x248] sm:$0xff]  ;;  %767 = vmatprep.subr.bf16.mxu0 %v766_v3  ;;  %v125_v12 = vld [vmem:[#allocation5 + $0x258] sm:$0xff]  ;;  %v772_v13 = vpack.c.bf16 %v120_v10, %v118_v9  ;;  %v122_v15 = vld [vmem:[#allocation5 + $0x240] sm:$0xff]  ;;  %s1032_s21 = smov 72   ;;  %vm652_vm6 = vcmask 195584   ;;  %vm654_vm7 = vcmask 392192  }
  0x2b   :  { %769 = vmatpush1.bf16.msra.mxu0 %v768_v7  ;;  %v774_v14 = vpack.c.bf16 %v125_v12, %v123_v11  ;;  %v124_v16 = vld [vmem:[#allocation5 + $0x250] sm:$0xff]  ;;  %v127_v17 = vld [vmem:[#allocation5 + $0x268] sm:$0xff]  ;;  %v129_v18 = vld [vmem:[#allocation5 + $0x278] sm:$0xff]  ;;  %vm656_vm8 = vcmask 588800   ;;  %vm658_vm9 = vcmask 785408   ;;  %vm660_vm10 = vcmask 982016  }
  0x2c   :  { %771 = vmatprep.subr.bf16.mxu0 %v770_v8  ;;  %v776_v19 = vpack.c.bf16 %v124_v16, %v122_v15  ;;  %v778_v20 = vpack.c.bf16 %v129_v18, %v127_v17  ;;  %v126_v21 = vld [vmem:[#allocation5 + $0x260] sm:$0xff]  ;;  %v128_v22 = vld [vmem:[#allocation5 + $0x270] sm:$0xff]  ;;  %v131_v23 = vld [vmem:[#allocation5 + $0x288] sm:$0xff]  ;;  %s1033_s22 = smov 8   ;;  %s1034_s23 = smov 32   ;;  %vm618_vm11 = vcmask 64512  }
  0x2d   :  { %v133_v24 = vld [vmem:[#allocation5 + $0x298] sm:$0xff]  ;;  %v780_v25 = vpack.c.bf16 %v128_v22, %v126_v21  ;;  %v130_v27 = vld [vmem:[#allocation5 + $0x280] sm:$0xff]  ;;  %v132_v28 = vld [vmem:[#allocation5 + $0x290] sm:$0xff]  ;;  %vm595_vm12 = vcmask 261120   ;;  %s1035_s24 = smov [#allocation7]  }
  0x2e   :  { %v782_v26 = vpack.c.bf16 %v133_v24, %v131_v23  ;;  %v135_v29 = vld [vmem:[#allocation5 + $0x2a8] sm:$0xff]  ;;  %v137_v30 = vld [vmem:[#allocation5 + $0x2b8] sm:$0xff]  ;;  %v784_v31 = vpack.c.bf16 %v132_v28, %v130_v27  ;;  %v134_v33 = vld [vmem:[#allocation5 + $0x2a0] sm:$0xff]  ;;  %s678_s25 = sshll.u32 %s1035_s24, 4  ;;  %s679_s25 = int_to_ptr.vmem [resolvable:$true] %s678_s25 }
  0x2f   :  { %773 = vmatpush1.bf16.msra.mxu0 %v772_v13  ;;  %v786_v32 = vpack.c.bf16 %v137_v30, %v135_v29  ;;  %v136_v34 = vld [vmem:[#allocation5 + $0x2b0] sm:$0xff]  ;;  %v139_v35 = vld [vmem:[#allocation5 + $0x2c8] sm:$0xff]  ;;  %v141_v36 = vld [vmem:[#allocation5 + $0x2d8] sm:$0xff]  ;;  %s969_s26 = scalar_lea.vmem %s679_s25, 256  ;;  %p974_p3 = scmp.lt.s32.totalorder %s679_s25, %s679_s25 }
  0x30   :  { %775 = vmatprep.subr.bf16.mxu0 %v774_v14  ;;  %v788_v37 = vpack.c.bf16 %v136_v34, %v134_v33  ;;  %v138_v38 = vld [vmem:[#allocation5 + $0x2c0] sm:$0xff]  ;;  %v140_v39 = vld [vmem:[#allocation5 + $0x2d0] sm:$0xff]  ;;  %v51_v40 = vld [vmem:[#allocation5 + $0x8] sm:$0xff]  ;;  %v790_v41 = vpack.c.bf16 %v141_v36, %v139_v35  ;;  %p970_p2 = scmp.ne.s32.totalorder %s679_s25, %s969_s26  ;;  %p975_p4 = scmp.lt.s32.totalorder %s969_s26, %s969_s26 }
  0x31   :  { %v143_v42 = vld [vmem:[#allocation5 + $0x2e8] sm:$0xff]  ;;  %v145_v43 = vld [vmem:[#allocation5 + $0x2f8] sm:$0xff]  ;;  %v50_v46 = vld [vmem:[#allocation5] sm:$0xff]  ;;  %v792_v51 = vpack.c.bf16 %v140_v39, %v138_v38 }
  0x32   :  { %v53_v44 = vld [vmem:[#allocation5 + $0x18] sm:$0xff]  ;;  %v52_v47 = vld [vmem:[#allocation5 + $0x10] sm:$0xff]  ;;  %v47_v48 = vld [vmem:[#allocation2 + $0x18] sm:$0xff]  ;;  %v794_v54 = vpack.c.bf16 %v145_v43, %v143_v42  ;;  %p976_p5 = por %p975_p4, %p974_p3 }
  0x33   :  { %777 = vmatpush1.bf16.msra.mxu0 %v776_v19  ;;  %v702_v45 = vpack.c.bf16 %v53_v44, %v51_v40  ;;  %v704_v49 = vpack.c.bf16 %v52_v47, %v50_v46  ;;  %389 = vmatprep.mubr.f32.mxu0 %v47_v48  ;;  %v55_v50 = vld [vmem:[#allocation5 + $0x28] sm:$0xff]  ;;  %v142_v52 = vld [vmem:[#allocation5 + $0x2e0] sm:$0xff]  ;;  %v57_v53 = vld [vmem:[#allocation5 + $0x38] sm:$0xff] }
  0x34   :  { %779 = vmatprep.subr.bf16.mxu0 %v778_v20  ;;  %v144_v55 = vld [vmem:[#allocation5 + $0x2f0] sm:$0xff]  ;;  %v706_v56 = vpack.c.bf16 %v57_v53, %v55_v50  ;;  %v54_v57 = vld [vmem:[#allocation5 + $0x20] sm:$0xff]  ;;  %v147_v59 = vld [vmem:[#allocation5 + $0x308] sm:$0xff]  ;;  %p977_p6 = pnand %p976_p5, %p970_p2 }
  0x35   :  { %703 = vmatprep.subr.bf16.mxu1 %v702_v45  ;;  %v56_v58 = vld [vmem:[#allocation5 + $0x30] sm:$0xff]  ;;  %v149_v60 = vld [vmem:[#allocation5 + $0x318] sm:$0xff]  ;;  %v59_v62 = vld [vmem:[#allocation5 + $0x48] sm:$0xff]  ;;  %v796_v0 = vpack.c.bf16 %v144_v55, %v142_v52 }
  0x36   :  { %705 = vmatpush1.bf16.msra.mxu1 %v704_v49  ;;  %v708_v61 = vpack.c.bf16 %v56_v58, %v54_v57  ;;  %v61_v63 = vld [vmem:[#allocation5 + $0x58] sm:$0xff]  ;;  %v146_v1 = vld [vmem:[#allocation5 + $0x300] sm:$0xff]  ;;  %v60_v4 = vld [vmem:[#allocation5 + $0x50] sm:$0xff]  ;;  %v798_v5 = vpack.c.bf16 %v149_v60, %v147_v59 }
  0x37   :  { %781 = vmatpush1.bf16.msra.mxu0 %v780_v25  ;;  %707 = vmatprep.subr.bf16.mxu1 %v706_v56  ;;  %v710_v2 = vpack.c.bf16 %v61_v63, %v59_v62  ;;  %v58_v3 = vld [vmem:[#allocation5 + $0x40] sm:$0xff]  ;;  %v148_v6 = vld [vmem:[#allocation5 + $0x310] sm:$0xff]  ;;  %v63_v8 = vld [vmem:[#allocation5 + $0x68] sm:$0xff] }
  0x38   :  { %783 = vmatprep.subr.bf16.mxu0 %v782_v26  ;;  %v712_v7 = vpack.c.bf16 %v60_v4, %v58_v3  ;;  %v65_v9 = vld [vmem:[#allocation5 + $0x78] sm:$0xff]  ;;  %v151_v10 = vld [vmem:[#allocation5 + $0x328] sm:$0xff]  ;;  %v62_v13 = vld [vmem:[#allocation5 + $0x60] sm:$0xff]  ;;  %v800_v15 = vpack.c.bf16 %v148_v6, %v146_v1 }
  0x39   :  { %v153_v11 = vld [vmem:[#allocation5 + $0x338] sm:$0xff]  ;;  %v714_v12 = vpack.c.bf16 %v65_v9, %v63_v8  ;;  %v64_v14 = vld [vmem:[#allocation5 + $0x70] sm:$0xff]  ;;  %v67_v16 = vld [vmem:[#allocation5 + $0x88] sm:$0xff] }
  0x3a   :  { %709 = vmatpush1.bf16.msra.mxu1 %v708_v61  ;;  %v69_v17 = vld [vmem:[#allocation5 + $0x98] sm:$0xff]  ;;  %v802_v18 = vpack.c.bf16 %v153_v11, %v151_v10  ;;  %v150_v19 = vld [vmem:[#allocation5 + $0x320] sm:$0xff]  ;;  %v152_v20 = vld [vmem:[#allocation5 + $0x330] sm:$0xff]  ;;  %v716_v22 = vpack.c.bf16 %v64_v14, %v62_v13 }
  0x3b   :  { %785 = vmatpush1.bf16.msra.mxu0 %v784_v31  ;;  %711 = vmatprep.subr.bf16.mxu1 %v710_v2  ;;  %v155_v21 = vld [vmem:[#allocation5 + $0x348] sm:$0xff]  ;;  %v157_v23 = vld [vmem:[#allocation5 + $0x358] sm:$0xff]  ;;  %v718_v24 = vpack.c.bf16 %v69_v17, %v67_v16  ;;  %v66_v25 = vld [vmem:[#allocation5 + $0x80] sm:$0xff]  ;;  %v804_v29 = vpack.c.bf16 %v152_v20, %v150_v19 }
  0x3c   :  { %787 = vmatprep.subr.bf16.mxu0 %v786_v32  ;;  %v68_v26 = vld [vmem:[#allocation5 + $0x90] sm:$0xff]  ;;  %v71_v27 = vld [vmem:[#allocation5 + $0xa8] sm:$0xff]  ;;  %v73_v28 = vld [vmem:[#allocation5 + $0xb8] sm:$0xff]  ;;  %v806_v30 = vpack.c.bf16 %v157_v23, %v155_v21 }
  0x3d   :  { %v154_v31 = vld [vmem:[#allocation5 + $0x340] sm:$0xff]  ;;  %v156_v32 = vld [vmem:[#allocation5 + $0x350] sm:$0xff]  ;;  %v159_v33 = vld [vmem:[#allocation5 + $0x368] sm:$0xff]  ;;  %v720_v34 = vpack.c.bf16 %v68_v26, %v66_v25  ;;  %v722_v36 = vpack.c.bf16 %v73_v28, %v71_v27 }
  0x3e   :  { %713 = vmatpush1.bf16.msra.mxu1 %v712_v7  ;;  %v161_v35 = vld [vmem:[#allocation5 + $0x378] sm:$0xff]  ;;  %v72_v38 = vld [vmem:[#allocation5 + $0xb0] sm:$0xff]  ;;  %v75_v39 = vld [vmem:[#allocation5 + $0xc8] sm:$0xff] }
  0x3f   :  { %789 = vmatpush1.bf16.msra.mxu0 %v788_v37  ;;  %715 = vmatprep.subr.bf16.mxu1 %v714_v12  ;;  %v70_v37 = vld [vmem:[#allocation5 + $0xa0] sm:$0xff]  ;;  %v77_v40 = vld [vmem:[#allocation5 + $0xd8] sm:$0xff]  ;;  %v810_v42 = vpack.c.bf16 %v161_v35, %v159_v33  ;;  %v160_v44 = vld [vmem:[#allocation5 + $0x370] sm:$0xff] }
  0x40   :  { %791 = vmatprep.subr.bf16.mxu0 %v790_v41  ;;  %v808_v41 = vpack.c.bf16 %v156_v32, %v154_v31  ;;  %v158_v43 = vld [vmem:[#allocation5 + $0x360] sm:$0xff]  ;;  %v163_v45 = vld [vmem:[#allocation5 + $0x388] sm:$0xff]  ;;  %v724_v46 = vpack.c.bf16 %v72_v38, %v70_v37  ;;  %v165_v47 = vld [vmem:[#allocation5 + $0x398] sm:$0xff]  ;;  %v726_v48 = vpack.c.bf16 %v77_v40, %v75_v39 }
  0x41   :  { %v74_v49 = vld [vmem:[#allocation5 + $0xc0] sm:$0xff]  ;;  %v76_v50 = vld [vmem:[#allocation5 + $0xd0] sm:$0xff]  ;;  %v81_v52 = vld [vmem:[#allocation5 + $0xf8] sm:$0xff]  ;;  %v812_v53 = vpack.c.bf16 %v160_v44, %v158_v43 }
  0x42   :  { %717 = vmatpush1.bf16.msra.mxu1 %v716_v22  ;;  %v162_v55 = vld [vmem:[#allocation5 + $0x380] sm:$0xff]  ;;  %v164_v56 = vld [vmem:[#allocation5 + $0x390] sm:$0xff]  ;;  %v167_v57 = vld [vmem:[#allocation5 + $0x3a8] sm:$0xff]  ;;  %v728_v58 = vpack.c.bf16 %v76_v50, %v74_v49 }
  0x43   :  { %793 = vmatpush1.bf16.msra.mxu0 %v792_v51  ;;  %719 = vmatprep.subr.bf16.mxu1 %v718_v24  ;;  %v79_v51 = vld [vmem:[#allocation5 + $0xe8] sm:$0xff]  ;;  %v169_v59 = vld [vmem:[#allocation5 + $0x3b8] sm:$0xff]  ;;  %v78_v61 = vld [vmem:[#allocation5 + $0xe0] sm:$0xff]  ;;  %v816_v1 = vpack.c.bf16 %v164_v56, %v162_v55 }
  0x44   :  { %795 = vmatprep.subr.bf16.mxu0 %v794_v54  ;;  %v814_v54 = vpack.c.bf16 %v165_v47, %v163_v45  ;;  %v730_v60 = vpack.c.bf16 %v81_v52, %v79_v51  ;;  %v80_v62 = vld [vmem:[#allocation5 + $0xf0] sm:$0xff]  ;;  %v83_v63 = vld [vmem:[#allocation5 + $0x108] sm:$0xff]  ;;  %v818_v2 = vpack.c.bf16 %v169_v59, %v167_v57  ;;  %v166_v3 = vld [vmem:[#allocation5 + $0x3a0] sm:$0xff] }
  0x45   :  { %v168_v4 = vld [vmem:[#allocation5 + $0x3b0] sm:$0xff]  ;;  %v732_v6 = vpack.c.bf16 %v80_v62, %v78_v61  ;;  %v173_v7 = vld [vmem:[#allocation5 + $0x3d8] sm:$0xff]  ;;  %v82_v9 = vld [vmem:[#allocation5 + $0x100] sm:$0xff] }
  0x46   :  { %721 = vmatpush1.bf16.msra.mxu1 %v720_v34  ;;  %v84_v10 = vld [vmem:[#allocation5 + $0x110] sm:$0xff]  ;;  %v87_v11 = vld [vmem:[#allocation5 + $0x128] sm:$0xff]  ;;  %v89_v12 = vld [vmem:[#allocation5 + $0x138] sm:$0xff]  ;;  %v820_v13 = vpack.c.bf16 %v168_v4, %v166_v3 }
  0x47   :  { %797 = vmatpush1.bf16.msra.mxu0 %v796_v0  ;;  %723 = vmatprep.subr.bf16.mxu1 %v722_v36  ;;  %v85_v0 = vld [vmem:[#allocation5 + $0x118] sm:$0xff]  ;;  %v172_v16 = vld [vmem:[#allocation5 + $0x3d0] sm:$0xff]  ;;  %v175_v17 = vld [vmem:[#allocation5 + $0x3e8] sm:$0xff]  ;;  %v738_v20 = vpack.c.bf16 %v89_v12, %v87_v11 }
  0x48   :  { %799 = vmatprep.subr.bf16.mxu0 %v798_v5  ;;  %v171_v5 = vld [vmem:[#allocation5 + $0x3c8] sm:$0xff]  ;;  %v734_v8 = vpack.c.bf16 %v85_v0, %v83_v63  ;;  %v177_v19 = vld [vmem:[#allocation5 + $0x3f8] sm:$0xff]  ;;  %v86_v21 = vld [vmem:[#allocation5 + $0x120] sm:$0xff] }
  0x49   :  { %v822_v14 = vpack.c.bf16 %v173_v7, %v171_v5  ;;  %v88_v22 = vld [vmem:[#allocation5 + $0x130] sm:$0xff]  ;;  %v91_v23 = vld [vmem:[#allocation5 + $0x148] sm:$0xff]  ;;  %v93_v24 = vld [vmem:[#allocation5 + $0x158] sm:$0xff]  ;;  %v826_v26 = vpack.c.bf16 %v177_v19, %v175_v17 }
  0x4a   :  { %725 = vmatpush1.bf16.msra.mxu1 %v724_v46  ;;  %v174_v27 = vld [vmem:[#allocation5 + $0x3e0] sm:$0xff]  ;;  %v176_v28 = vld [vmem:[#allocation5 + $0x3f0] sm:$0xff]  ;;  %v181_v31 = vld [vmem:[#allocation5 + $0x418] sm:$0xff]  ;;  %v742_v32 = vpack.c.bf16 %v93_v24, %v91_v23 }
  0x4b   :  { %801 = vmatpush1.bf16.msra.mxu0 %v800_v15  ;;  %727 = vmatprep.subr.bf16.mxu1 %v726_v48  ;;  %v170_v15 = vld [vmem:[#allocation5 + $0x3c0] sm:$0xff]  ;;  %v92_v34 = vld [vmem:[#allocation5 + $0x150] sm:$0xff]  ;;  %v95_v35 = vld [vmem:[#allocation5 + $0x168] sm:$0xff]  ;;  %v828_v37 = vpack.c.bf16 %v176_v28, %v174_v27 }
  0x4c   :  { %803 = vmatprep.subr.bf16.mxu0 %v802_v18  ;;  %v736_v18 = vpack.c.bf16 %v84_v10, %v82_v9  ;;  %v824_v25 = vpack.c.bf16 %v172_v16, %v170_v15  ;;  %v90_v33 = vld [vmem:[#allocation5 + $0x140] sm:$0xff]  ;;  %v97_v36 = vld [vmem:[#allocation5 + $0x178] sm:$0xff]  ;;  %v180_v40 = vld [vmem:[#allocation5 + $0x410] sm:$0xff] }
  0x4d   :  { %v178_v39 = vld [vmem:[#allocation5 + $0x400] sm:$0xff]  ;;  %v185_v43 = vld [vmem:[#allocation5 + $0x438] sm:$0xff]  ;;  %v746_v44 = vpack.c.bf16 %v97_v36, %v95_v35  ;;  %v96_v46 = vld [vmem:[#allocation5 + $0x170] sm:$0xff] }
  0x4e   :  { %729 = vmatpush1.bf16.msra.mxu1 %v728_v58  ;;  %v94_v45 = vld [vmem:[#allocation5 + $0x160] sm:$0xff]  ;;  %v99_v47 = vld [vmem:[#allocation5 + $0x188] sm:$0xff]  ;;  %v101_v48 = vld [vmem:[#allocation5 + $0x198] sm:$0xff]  ;;  %v832_v51 = vpack.c.bf16 %v180_v40, %v178_v39 }
  0x4f   :  { %805 = vmatpush1.bf16.msra.mxu0 %v804_v29  ;;  %731 = vmatprep.subr.bf16.mxu1 %v730_v60  ;;  %v179_v29 = vld [vmem:[#allocation5 + $0x408] sm:$0xff]  ;;  %v45_v49 = vld [vmem:[#allocation2 + $0x8] sm:$0xff]  ;;  %v46_v50 = vld [vmem:[#allocation2 + $0x10] sm:$0xff]  ;;  %v748_v56 = vpack.c.bf16 %v96_v46, %v94_v45  ;;  %v750_v59 = vpack.c.bf16 %v101_v48, %v99_v47 }
  0x50   :  { %807 = vmatprep.subr.bf16.mxu0 %v806_v30  ;;  %v740_v30 = vpack.c.bf16 %v88_v22, %v86_v21  ;;  %v830_v38 = vpack.c.bf16 %v181_v31, %v179_v29  ;;  %v182_v52 = vld [vmem:[#allocation5 + $0x420] sm:$0xff]  ;;  %318 = vmatprep.mubr.f32.mxu1 %v45_v49  ;;  %v187_v55 = vld [vmem:[#allocation5 + $0x448] sm:$0xff]  ;;  %v49_v57 = vld [vmem:[#allocation2 + $0x28] sm:$0xff] }
  0x51   :  { %v189_v58 = vld [vmem:[#allocation5 + $0x458] sm:$0xff]  ;;  %v98_v60 = vld [vmem:[#allocation5 + $0x180] sm:$0xff]  ;;  %v100_v61 = vld [vmem:[#allocation5 + $0x190] sm:$0xff] }
  0x52   :  { %733 = vmatpush1.bf16.msra.mxu1 %v732_v6  ;;  %v103_v62 = vld [vmem:[#allocation5 + $0x1a8] sm:$0xff]  ;;  %v105_v63 = vld [vmem:[#allocation5 + $0x1b8] sm:$0xff]  ;;  %v188_v3 = vld [vmem:[#allocation5 + $0x450] sm:$0xff]  ;;  %v752_v5 = vpack.c.bf16 %v100_v61, %v98_v60 }
  0x53   :  { %809 = vmatpush1.bf16.msra.mxu0 %v808_v41  ;;  %735 = vmatprep.subr.bf16.mxu1 %v734_v8  ;;  %v183_v41 = vld [vmem:[#allocation5 + $0x428] sm:$0xff]  ;;  %v193_v6 = vld [vmem:[#allocation5 + $0x478] sm:$0xff]  ;;  %v754_v7 = vpack.c.bf16 %v105_v63, %v103_v62  ;;  %v102_v8 = vld [vmem:[#allocation5 + $0x1a0] sm:$0xff] }
  0x54   :  { %811 = vmatprep.subr.bf16.mxu0 %v810_v42  ;;  %v744_v42 = vpack.c.bf16 %v92_v34, %v90_v33  ;;  %v191_v4 = vld [vmem:[#allocation5 + $0x468] sm:$0xff]  ;;  %v104_v9 = vld [vmem:[#allocation5 + $0x1b0] sm:$0xff]  ;;  %v109_v11 = vld [vmem:[#allocation5 + $0x1d8] sm:$0xff] }
  0x55   :  { %v107_v10 = vld [vmem:[#allocation5 + $0x1c8] sm:$0xff]  ;;  %v192_v15 = vld [vmem:[#allocation5 + $0x470] sm:$0xff]  ;;  %v756_v17 = vpack.c.bf16 %v104_v9, %v102_v8  ;;  %v113_v23 = vld [vmem:[#allocation5 + $0x1f8] sm:$0xff] }
  0x56   :  { %737 = vmatpush1.bf16.msra.mxu1 %v736_v18  ;;  %v195_v16 = vld [vmem:[#allocation5 + $0x488] sm:$0xff]  ;;  %v197_v18 = vld [vmem:[#allocation5 + $0x498] sm:$0xff]  ;;  %v758_v19 = vpack.c.bf16 %v109_v11, %v107_v10  ;;  %v108_v21 = vld [vmem:[#allocation5 + $0x1d0] sm:$0xff] }
  0x57   :  { %813 = vmatpush1.bf16.msra.mxu0 %v812_v53  ;;  %739 = vmatprep.subr.bf16.mxu1 %v738_v20  ;;  %v834_v53 = vpack.c.bf16 %v185_v43, %v183_v41  ;;  %v106_v20 = vld [vmem:[#allocation5 + $0x1c0] sm:$0xff]  ;;  %v111_v22 = vld [vmem:[#allocation5 + $0x1e8] sm:$0xff]  ;;  %v196_v27 = vld [vmem:[#allocation5 + $0x490] sm:$0xff] }
  0x58   :  { %815 = vmatprep.subr.bf16.mxu0 %v814_v54  ;;  %v184_v54 = vld [vmem:[#allocation5 + $0x430] sm:$0xff]  ;;  %v199_v28 = vld [vmem:[#allocation5 + $0x4a8] sm:$0xff]  ;;  %v760_v29 = vpack.c.bf16 %v108_v21, %v106_v20  ;;  %v762_v31 = vpack.c.bf16 %v113_v23, %v111_v22  ;;  %v198_v36 = vld [vmem:[#allocation5 + $0x4a0] sm:$0xff] }
  0x59   :  { %v836_v0 = vpack.c.bf16 %v184_v54, %v182_v52  ;;  %v112_v33 = vld [vmem:[#allocation5 + $0x1f0] sm:$0xff]  ;;  %v203_v39 = vld [vmem:[#allocation5 + $0x4c8] sm:$0xff]  ;;  %v205_v40 = vld [vmem:[#allocation5 + $0x4d8] sm:$0xff] }
  0x5a   :  { %741 = vmatpush1.bf16.msra.mxu1 %v740_v30  ;;  %v201_v30 = vld [vmem:[#allocation5 + $0x4b8] sm:$0xff]  ;;  %v202_v43 = vld [vmem:[#allocation5 + $0x4c0] sm:$0xff]  ;;  %v44_v45 = vld [vmem:[#allocation2] sm:$0xff] }
  0x5b   :  { %817 = vmatpush1.bf16.msra.mxu0 %v816_v1  ;;  %743 = vmatprep.subr.bf16.mxu1 %v742_v32  ;;  %v838_v1 = vpack.c.bf16 %v189_v58, %v187_v55  ;;  %v110_v32 = vld [vmem:[#allocation5 + $0x1e0] sm:$0xff]  ;;  %v850_v35 = vpack.c.bf16 %v201_v30, %v199_v28  ;;  %v207_v46 = vld [vmem:[#allocation5 + $0x4e8] sm:$0xff]  ;;  %v209_v47 = vld [vmem:[#allocation5 + $0x4f8] sm:$0xff] }
  0x5c   :  { %819 = vmatprep.subr.bf16.mxu0 %v818_v2  ;;  %v186_v2 = vld [vmem:[#allocation5 + $0x440] sm:$0xff]  ;;  %v858_v49 = vpack.c.bf16 %v209_v47, %v207_v46  ;;  %v211_v52 = vld [vmem:[#allocation5 + $0x508] sm:$0xff]  ;;  %v216_v63 = vld [vmem:[#allocation5 + $0x530] sm:$0xff] }
  0x5d   :  { %v840_v12 = vpack.c.bf16 %v188_v3, %v186_v2  ;;  %v215_v58 = vld [vmem:[#allocation5 + $0x528] sm:$0xff]  ;;  %v214_v62 = vld [vmem:[#allocation5 + $0x520] sm:$0xff]  ;;  %v224_v11 = vld [vmem:[#allocation5 + $0x570] sm:$0xff] }
  0x5e   :  { %745 = vmatpush1.bf16.msra.mxu1 %v744_v42  ;;  %v854_v42 = vpack.c.bf16 %v205_v40, %v203_v39  ;;  %v868_v2 = vpack.c.bf16 %v216_v63, %v214_v62  ;;  %v222_v10 = vld [vmem:[#allocation5 + $0x560] sm:$0xff]  ;;  %v232_v23 = vld [vmem:[#allocation5 + $0x5b0] sm:$0xff]  ;;  %v239_v30 = vld [vmem:[#allocation5 + $0x5e8] sm:$0xff]  ;;  %v244_v40 = vlaneseq }
  0x5f   :  { %821 = vmatpush1.bf16.msra.mxu0 %v820_v13  ;;  %747 = vmatprep.subr.bf16.mxu1 %v746_v44  ;;  %v842_v13 = vpack.c.bf16 %v193_v6, %v191_v4  ;;  %v204_v44 = vld [vmem:[#allocation5 + $0x4d0] sm:$0xff]  ;;  %v218_v4 = vld [vmem:[#allocation5 + $0x540] sm:$0xff]  ;;  %v223_v6 = vld [vmem:[#allocation5 + $0x568] sm:$0xff] }
  0x60   :  { %823 = vmatprep.subr.bf16.mxu0 %v822_v14  ;;  %v190_v14 = vld [vmem:[#allocation5 + $0x460] sm:$0xff]  ;;  %v856_v48 = vpack.c.bf16 %v204_v44, %v202_v43  ;;  %v242_v43 = vld [vmem:[%s1188_s2] sm:$0x3]  ;;  %s1026_s2 = smov 80  }
  0x61   :  { %v844_v24 = vpack.c.bf16 %v192_v15, %v190_v14  ;;  %v876_v14 = vpack.c.bf16 %v224_v11, %v222_v10  ;;  %v230_v22 = vld [vmem:[#allocation5 + $0x5a0] sm:$0xff] }
  0x62   :  { %749 = vmatpush1.bf16.msra.mxu1 %v748_v56  ;;  %v210_v56 = vld [vmem:[#allocation5 + $0x500] sm:$0xff] }
  0x63   :  { %825 = vmatpush1.bf16.msra.mxu0 %v824_v25  ;;  %751 = vmatprep.subr.bf16.mxu1 %v750_v59  ;;  %v846_v25 = vpack.c.bf16 %v197_v18, %v195_v16  ;;  %v217_v59 = vld [vmem:[#allocation5 + $0x538] sm:$0xff]  ;;  %v226_v16 = vld [vmem:[#allocation5 + $0x580] sm:$0xff]  ;;  %v231_v18 = vld [vmem:[#allocation5 + $0x5a8] sm:$0xff] }
  0x64   :  { %827 = vmatprep.subr.bf16.mxu0 %v826_v26  ;;  %v194_v26 = vld [vmem:[#allocation5 + $0x480] sm:$0xff]  ;;  %v866_v61 = vpack.c.bf16 %v217_v59, %v215_v58 }
  0x65   :  { %v848_v34 = vpack.c.bf16 %v196_v27, %v194_v26  ;;  %v884_v26 = vpack.c.bf16 %v232_v23, %v230_v22  ;;  %v234_v28 = vld [vmem:[#allocation5 + $0x5c0] sm:$0xff] }
  0x66   :  { %753 = vmatpush1.bf16.msra.mxu1 %v752_v5  ;;  %v220_v5 = vld [vmem:[#allocation5 + $0x550] sm:$0xff] }
  0x67   :  { %829 = vmatpush1.bf16.msra.mxu0 %v828_v37  ;;  %755 = vmatprep.subr.bf16.mxu1 %v754_v7  ;;  %v200_v37 = vld [vmem:[#allocation5 + $0x4b0] sm:$0xff]  ;;  %v225_v7 = vld [vmem:[#allocation5 + $0x578] sm:$0xff]  ;;  %v872_v8 = vpack.c.bf16 %v220_v5, %v218_v4 }
  0x68   :  { %831 = vmatprep.subr.bf16.mxu0 %v830_v38  ;;  %v764_v38 = vpack.c.bf16 %v112_v33, %v110_v32  ;;  %v852_v41 = vpack.c.bf16 %v200_v37, %v198_v36  ;;  %v874_v9 = vpack.c.bf16 %v225_v7, %v223_v6  ;;  %v48_v37 = vld [vmem:[#allocation2 + $0x20] sm:$0xff] }
  0x6a   :  { %390 = vmatmul.mubr.f32.vlgmr.msra.gmra.mrb[0].mxu0 %v46_v50  ;;  %757 = vmatpush1.bf16.msra.mxu1 %v756_v17  ;;  %v206_v50 = vld [vmem:[#allocation5 + $0x4e0] sm:$0xff]  ;;  %v228_v17 = vld [vmem:[#allocation5 + $0x590] sm:$0xff] }
  0x6b   :  { %833 = vmatpush1.bf16.msra.mxu0 %v832_v51  ;;  %460 = vmatprep.mubr.f32.mxu0 %v49_v57  ;;  %v208_v51 = vld [vmem:[#allocation5 + $0x4f0] sm:$0xff]  ;;  %v880_v20 = vpack.c.bf16 %v228_v17, %v226_v16 }
  0x6c   :  { %835 = vmatprep.subr.bf16.mxu0 %v834_v53  ;;  %759 = vmatprep.subr.bf16.mxu1 %v758_v19  ;;  %v213_v53 = vld [vmem:[#allocation5 + $0x518] sm:$0xff]  ;;  %v860_v54 = vpack.c.bf16 %v208_v51, %v206_v50  ;;  %v212_v57 = vld [vmem:[#allocation5 + $0x510] sm:$0xff] }
  0x6d   :  { %v862_v55 = vpack.c.bf16 %v213_v53, %v211_v52  ;;  %v864_v60 = vpack.c.bf16 %v212_v57, %v210_v56  ;;  %v233_v19 = vld [vmem:[#allocation5 + $0x5b8] sm:$0xff] }
  0x6e   :  { %761 = vmatpush1.bf16.msra.mxu1 %v760_v29  ;;  %v882_v21 = vpack.c.bf16 %v233_v19, %v231_v18  ;;  %v236_v29 = vld [vmem:[#allocation5 + $0x5d0] sm:$0xff] }
  0x6f   :  { %837 = vmatpush1.bf16.msra.mxu0 %v836_v0  ;;  %763 = vmatprep.subr.bf16.mxu1 %v762_v31  ;;  %v219_v0 = vld [vmem:[#allocation5 + $0x548] sm:$0xff]  ;;  %v241_v31 = vld [vmem:[#allocation5 + $0x5f8] sm:$0xff]  ;;  %v888_v32 = vpack.c.bf16 %v236_v29, %v234_v28 }
  0x70   :  { %839 = vmatprep.subr.bf16.mxu0 %v838_v1  ;;  %v221_v1 = vld [vmem:[#allocation5 + $0x558] sm:$0xff]  ;;  %v890_v33 = vpack.c.bf16 %v241_v31, %v239_v30 }
  0x71   :  { %v870_v3 = vpack.c.bf16 %v221_v1, %v219_v0 }
  0x72   :  { %765 = vmatpush1.bf16.msra.mxu1 %v764_v38 }
  0x73   :  { %841 = vmatpush1.bf16.msra.mxu0 %v840_v12  ;;  %v227_v12 = vld [vmem:[#allocation5 + $0x588] sm:$0xff] }
  0x74   :  { %843 = vmatprep.subr.bf16.mxu0 %v842_v13  ;;  %v229_v13 = vld [vmem:[#allocation5 + $0x598] sm:$0xff] }
  0x75   :  { %319 = vmatmul.mubr.f32.vlgmr.msra.gmra.mrb[0].mxu1 %v44_v45  ;;  %v878_v15 = vpack.c.bf16 %v229_v13, %v227_v12 }
  0x77   :  { %845 = vmatpush1.bf16.msra.mxu0 %v844_v24  ;;  %v235_v24 = vld [vmem:[#allocation5 + $0x5c8] sm:$0xff] }
  0x78   :  { %847 = vmatprep.subr.bf16.mxu0 %v846_v25  ;;  %v237_v25 = vld [vmem:[#allocation5 + $0x5d8] sm:$0xff] }
  0x79   :  { %v886_v27 = vpack.c.bf16 %v237_v25, %v235_v24 }
  0x7b   :  { %849 = vmatpush1.bf16.msra.mxu0 %v848_v34  ;;  %v238_v34 = vld [vmem:[#allocation5 + $0x5e0] sm:$0xff] }
  0x7c   :  { %851 = vmatprep.subr.bf16.mxu0 %v850_v35  ;;  %v240_v35 = vld [vmem:[#allocation5 + $0x5f0] sm:$0xff] }
  0x7d   :  { %v892_v36 = vpack.c.bf16 %v240_v35, %v238_v34 }
  0x7f   :  { %853 = vmatpush1.bf16.msra.mxu0 %v852_v41  ;;  %v245_v41 = vshrl.u32 %v244_v40, 7 }
  0x80   :  { %855 = vmatprep.subr.bf16.mxu0 %v854_v42 }
  0x81   :  { %v246_v42 = vsub.s32 0, %v245_v41  ;;  %v250_v44 = vsub.s32 1, %v245_v41 }
  0x83   :  { %857 = vmatpush1.bf16.msra.mxu0 %v856_v48  ;;  %v247_v45 = vrot.slane %v242_v43, %v246_v42  ;;  %v251_v46 = vrot.slane %v242_v43, %v250_v44 }
  0x84   :  { %859 = vmatprep.subr.bf16.mxu0 %v858_v49 }
  0x87   :  { %861 = vmatpush1.bf16.msra.mxu0 %v860_v54 }
  0x88   :  { %863 = vmatprep.subr.bf16.mxu0 %v862_v55 }
  0x8b   :  { %865 = vmatpush1.bf16.msra.mxu0 %v864_v60 }
  0x8c   :  { %867 = vmatprep.subr.bf16.mxu0 %v866_v61 }
  0x8f   :  { %869 = vmatpush1.bf16.msra.mxu0 %v868_v2 }
  0x90   :  { %871 = vmatprep.subr.bf16.mxu0 %v870_v3 }
  0x93   :  { %873 = vmatpush1.bf16.msra.mxu0 %v872_v8 }
  0x94   :  { %875 = vmatprep.subr.bf16.mxu0 %v874_v9 }
  0x97   :  { %877 = vmatpush1.bf16.msra.mxu0 %v876_v14 }
  0x98   :  { %879 = vmatprep.subr.bf16.mxu0 %v878_v15 }
  0x9b   :  { %881 = vmatpush1.bf16.msra.mxu0 %v880_v20 }
  0x9c   :  { %883 = vmatprep.subr.bf16.mxu0 %v882_v21 }
  0x9f   :  { %885 = vmatpush1.bf16.msra.mxu0 %v884_v26 }
  0xa0   :  { %887 = vmatprep.subr.bf16.mxu0 %v886_v27 }
  0xa3   :  { %889 = vmatpush1.bf16.msra.mxu0 %v888_v32 }
  0xa4   :  { %891 = vmatprep.subr.bf16.mxu0 %v890_v33 }
  0xa7   :  { %893 = vmatpush1.bf16.msra.mxu0 %v892_v36 }
  0xaa   :  { %461 = vmatmul.mubr.f32.vlgmr.msra.gmra.mrb[0].mxu0 %v48_v37 }
 0x148   :  { %v320_v38 = vpop.f32.mrb[0].mxu1 }
 0x149   :  { %v322_v39 = vpop.f32.mrb[1].mxu1  ;;  %v321_v47 = vadd.f32 %v320_v38, %v247_v45 }
 0x14a   :  { %v323_v48 = vadd.f32 %v322_v39, %v251_v46 }
 0x17d   :  { %v462_v49 = vpop.f32.mrb[0].mxu0 }
 0x17e   :  { %v1097_v50 = vadd.f32 %v462_v49, %v321_v47  ;;  %v464_v51 = vpop.f32.mrb[1].mxu0 }
 0x17f   :  { %v1099_v52 = vadd.f32 %v464_v51, %v323_v48 }
 0x180   :  { %467 = vst [vmem:[#allocation7] sm:$0xff] %v1097_v50  ;;  %v469_v53 = vmul.f32 %v1097_v50, %v1097_v50 }
 0x181   :  { %468 = vst [vmem:[#allocation7 + $0x8] sm:$0xff] %v1099_v52 }
 0x182   :  { %471 = vrot.lane.b32.xlu0 %v469_v53, %s1025_s15 }
 0x186   :  { %475 = vrot.lane.b32.xlu0 %v469_v53, %s1026_s2 }
 0x18a   :  { %500 = vrot.lane.b32.xlu0 %v1097_v50, %s1027_s16 }
 0x1f4   :  { %v472_v54 = vpop.permute.xlu0 %471 }
 0x1f5   :  { %v474_v55 = vadd.f32 %v472_v54, %v469_v53 }
 0x1f8   :  { %v476_v56 = vpop.permute.xlu0 %475 }
 0x1f9   :  { %v478_v57 = vadd.f32 %v476_v56, %v474_v55 }
 0x1fb   :  { %917 = vrsqrt.f32 %v478_v57  ;;  %vm481_vm0 = vcmp.eq.f32.partialorder %v478_v57, inf  ;;  %v484_v60 = vand.u32 2147483648, %v478_v57  ;;  %vm483_vm1 = vcmp.eq.f32.partialorder %v478_v57, 0.0 }
 0x1fc   :  { %v501_v3 = vpop.permute.xlu0 %500 }
 0x205   :  { %v918_v58 = vpop.eup %917 }
 0x206   :  { %v480_v59 = vmul.f32 %v918_v58, %v478_v57 }
 0x208   :  { %v482_v61 = vsel %vm481_vm0, %v478_v57, %v480_v59 }
 0x209   :  { %v485_v62 = vsel %vm483_vm1, %v484_v60, %v482_v61 }
 0x20a   :  { %v486_v63 = vmax.f32 %v485_v62, 1e-12 }
 0x20c   :  { %919 = vrcp.f32 %v486_v63 }
 0x216   :  { %v920_v0 = vpop.eup %919 }
 0x217   :  { %491 = vrot.lane.b32.xlu1 %v920_v0, %s1028_s17  ;;  %v1126_v10 = vmul.f32 %v920_v0, %v1097_v50 }
 0x219   :  { %v503_v12 = vmul.f32 %v501_v3, %v1126_v10 }
 0x21b   :  { %495 = vrot.lane.b32.xlu1 %v920_v0, %s1029_s18 }
 0x21f   :  { %511 = vrot.lane.b32.xlu1 %v1099_v52, %s1027_s16 }
 0x289   :  { %v492_v1 = vpop.permute.xlu1 %491 }
 0x28a   :  { %v1112_v2 = vmul.f32 %v1097_v50, %v492_v1 }
 0x28c   :  { %v504_v4 = vmul.f32 %v501_v3, %v1112_v2  ;;  %v653_v48 = vsel %vm652_vm6, %v1126_v10, %v1112_v2 }
 0x28d   :  { %v496_v5 = vpop.permute.xlu1 %495 }
 0x28e   :  { %506 = vrot.lane.b32.xlu0 %v504_v4, %s1025_s15  ;;  %v1117_v6 = vmul.f32 %v1097_v50, %v496_v5 }
 0x290   :  { %v655_v51 = vsel %vm654_vm7, %v653_v48, %v1117_v6 }
 0x291   :  { %v512_v7 = vpop.permute.xlu1 %511 }
 0x292   :  { %v514_v8 = vsel %vm513_vm2, %v501_v3, %v512_v7  ;;  %529 = vrot.lane.b32.xlu0 %v1112_v2, %s1025_s15 }
 0x293   :  { %v516_v9 = vmul.f32 %v514_v8, %v1117_v6 }
 0x295   :  { %518 = vrot.lane.b32.xlu1 %v516_v9, %s1026_s2 }
 0x299   :  { %539 = vrot.lane.b32.xlu1 %v1117_v6, %s1026_s2 }
 0x300   :  { %v507_v11 = vpop.permute.xlu0 %506 }
 0x301   :  { %v509_v13 = vadd.f32 %v507_v11, %v503_v12 }
 0x304   :  { %v530_v16 = vpop.permute.xlu0 %529 }
 0x307   :  { %v519_v14 = vpop.permute.xlu1 %518 }
 0x308   :  { %v521_v15 = vadd.f32 %v519_v14, %v509_v13 }
 0x30a   :  { %v532_v17 = vmul.f32 %v530_v16, %v521_v15  ;;  %v522_v20 = vmul.f32 %v521_v15, %v1126_v10 }
 0x30b   :  { %v540_v18 = vpop.permute.xlu1 %539 }
 0x30c   :  { %v542_v19 = vmul.f32 %v540_v18, %v521_v15  ;;  %534 = vrot.lane.b32.xlu0 %v532_v17, %s1030_s19 }
 0x30e   :  { %544 = vrot.lane.b32.xlu1 %v542_v19, %s1031_s20 }
 0x310   :  { %524 = vrot.lane.b32.xlu0 %v522_v20, %s1032_s21 }
 0x37e   :  { %v535_v21 = vpop.permute.xlu0 %534 }
 0x37f   :  { %v537_v22 = vsub.f32 %v1097_v50, %v535_v21 }
 0x380   :  { %v545_v23 = vpop.permute.xlu1 %544 }
 0x381   :  { %v550_v24 = vmul.f32 %v537_v22, %v537_v22  ;;  %v547_v25 = vsub.f32 %v1097_v50, %v545_v23  ;;  %v548_v26 = vsub.f32 %v1099_v52, %v545_v23 }
 0x382   :  { %v525_v29 = vpop.permute.xlu0 %524 }
 0x383   :  { %v556_v27 = vmul.f32 %v547_v25, %v547_v25  ;;  %552 = vrot.lane.b32.xlu1 %v550_v24, %s1025_s15  ;;  %v557_v28 = vmul.f32 %v548_v26, %v548_v26  ;;  %v527_v30 = vsub.f32 %v1097_v50, %v525_v29 }
 0x385   :  { %560 = vrot.lane.b32.xlu0 %v556_v27, %s1026_s2  ;;  %v549_v32 = vmul.f32 %v527_v30, %v527_v30 }
 0x387   :  { %562 = vrot.lane.b32.xlu1 %v557_v28, %s1026_s2 }
 0x3f5   :  { %v553_v31 = vpop.permute.xlu1 %552 }
 0x3f6   :  { %v555_v33 = vadd.f32 %v553_v31, %v549_v32 }
 0x3f7   :  { %v561_v34 = vpop.permute.xlu0 %560 }
 0x3f9   :  { %v563_v35 = vpop.permute.xlu1 %562 }
 0x3fa   :  { %v565_v36 = vsel %vm564_vm3, %v561_v34, %v563_v35 }
 0x3fb   :  { %v567_v37 = vadd.f32 %v565_v36, %v555_v33 }
 0x3fd   :  { %921 = vrsqrt.f32 %v567_v37  ;;  %vm570_vm4 = vcmp.eq.f32.partialorder %v567_v37, inf  ;;  %v573_v40 = vand.u32 2147483648, %v567_v37  ;;  %vm572_vm5 = vcmp.eq.f32.partialorder %v567_v37, 0.0 }
 0x407   :  { %v922_v38 = vpop.eup %921 }
 0x408   :  { %v569_v39 = vmul.f32 %v922_v38, %v567_v37 }
 0x40a   :  { %v571_v41 = vsel %vm570_vm4, %v567_v37, %v569_v39 }
 0x40b   :  { %v574_v42 = vsel %vm572_vm5, %v573_v40, %v571_v41 }
 0x40c   :  { %v575_v43 = vmax.f32 %v574_v42, 1e-12 }
 0x40e   :  { %923 = vrcp.f32 %v575_v43 }
 0x418   :  { %v924_v44 = vpop.eup %923 }
 0x419   :  { %584 = vrot.lane.b32.xlu1 %v924_v44, %s1029_s18  ;;  %580 = vrot.lane.b32.xlu0 %v924_v44, %s1028_s17  ;;  %v578_v45 = vmul.f32 %v924_v44, %v527_v30 }
 0x41b   :  { %v657_v52 = vsel %vm656_vm8, %v655_v51, %v578_v45 }
 0x48b   :  { %v585_v46 = vpop.permute.xlu1 %584  ;;  %v581_v47 = vpop.permute.xlu0 %580 }
 0x48c   :  { %v587_v49 = vmul.f32 %v585_v46, %v547_v25  ;;  %v583_v50 = vmul.f32 %v581_v47, %v537_v22  ;;  %v1144_v55 = vmul.f32 %v585_v46, %v548_v26 }
 0x48e   :  { %614 = vrot.lane.b32.xlu1 %v587_v49, %s1033_s22  ;;  %600 = vrot.lane.b32.xlu0 %v583_v50, %s1026_s2  ;;  %v659_v53 = vsel %vm658_vm9, %v657_v52, %v583_v50 }
 0x48f   :  { %v661_v54 = vsel %vm660_vm10, %v659_v53, %v587_v49 }
 0x490   :  { %670 = vst [vmem:[#allocation8] sm:$0xff] %v661_v54 }
 0x492   :  { %616 = vrot.lane.b32.xlu0 %v1144_v55, %s1033_s22  ;;  %631 = vrot.lane.b32.xlu1 %v578_v45, %s1026_s2 }
 0x496   :  { %610 = vrot.lane.b32.xlu0 %v578_v45, %s1025_s15  ;;  %593 = vrot.lane.b32.xlu1 %v1144_v55, %s1034_s23 }
 0x49a   :  { %591 = vrot.lane.b32.xlu0 %v587_v49, %s1034_s23 }
 0x49e   :  { %627 = vrot.lane.b32.xlu0 %v583_v50, %s1034_s23 }
 0x500   :  { %v615_v56 = vpop.permute.xlu1 %614  ;;  %v601_v57 = vpop.permute.xlu0 %600 }
 0x501   :  { %v603_v58 = vmul.f32 %v601_v57, %v1117_v6 }
 0x503   :  { %605 = vrot.lane.b32.xlu1 %v603_v58, %s1025_s15 }
 0x504   :  { %v617_v59 = vpop.permute.xlu0 %616  ;;  %v632_v60 = vpop.permute.xlu1 %631 }
 0x505   :  { %v619_v61 = vsel %vm618_vm11, %v615_v56, %v617_v59  ;;  %v634_v62 = vmul.f32 %v632_v60, %v1112_v2 }
 0x506   :  { %v621_v63 = vmul.f32 %v619_v61, %v1126_v10 }
 0x507   :  { %636 = vrot.lane.b32.xlu0 %v634_v62, %s1025_s15 }
 0x508   :  { %623 = vrot.lane.b32.xlu1 %v621_v63, %s1029_s18  ;;  %v611_v0 = vpop.permute.xlu0 %610  ;;  %v594_v3 = vpop.permute.xlu1 %593 }
 0x50c   :  { %v592_v1 = vpop.permute.xlu0 %591 }
 0x50d   :  { %v596_v4 = vsel %vm595_vm12, %v592_v1, %v594_v3 }
 0x50e   :  { %v598_v5 = vmul.f32 %v596_v4, %v1112_v2 }
 0x50f   :  { %980 = shalt.err (!%p977_p6)
}
 0x510   :  { %s981_s29 = scalar_lea.hbm %s1189_s3, 256 }
 0x511   :  { %p982_p7 = scmp.ne.s32.totalorder %s1189_s3, %s981_s29  ;;  %p985_p8 = scmp.lt.u32.totalorder %s981_s29, %s1189_s3 }
 0x513   :  { %p987_p9 = pnand %p985_p8, %p982_p7 }
 0x515   :  { %990 = shalt.err (!%p987_p9)
}
 0x516   :  { %681 = dma.vmem_to_hbm [thread:$0]  %s679_s25, 256, %s1189_s3, [#allocation4]   ;;  %v628_v2 = vpop.permute.xlu0 %627  ;;  %v613_v11 = vmul.f32 %v611_v0, %v1117_v6  ;;  %vm662_vm13 = vcmask 130048   ;;  %vm664_vm14 = vcmask 326656   ;;  %vm666_vm15 = vcmask 523264  }
 0x517   :  { %v630_v9 = vmul.f32 %v628_v2, %v1126_v10  ;;  %s1036_s10 = smov 64   ;;  %s1037_s3 = smov [#allocation8]   ;;  %vm668_vm0 = vcmask 719872  }
 0x518   :  { %s688_s0 = sshll.u32 %s1037_s3, 4  ;;  %s689_s0 = int_to_ptr.vmem [resolvable:$true] %s688_s0 }
 0x519   :  { %s991_s11 = scalar_lea.vmem %s689_s0, 256  ;;  %p996_p11 = scmp.lt.s32.totalorder %s689_s0, %s689_s0 }
 0x51a   :  { %p992_p10 = scmp.ne.s32.totalorder %s689_s0, %s991_s11  ;;  %p997_p12 = scmp.lt.s32.totalorder %s991_s11, %s991_s11 }
 0x51c   :  { %p998_p13 = por %p997_p12, %p996_p11 }
 0x51e   :  { %p999_p0 = pnand %p998_p13, %p992_p10 }
 0x575   :  { %v606_v7 = vpop.permute.xlu1 %605 }
 0x576   :  { %v608_v8 = vsub.f32 %v598_v5, %v606_v7 }
 0x578   :  { %641 = vrot.lane.b32.xlu1 %v608_v8, %s1031_s20 }
 0x579   :  { %v637_v12 = vpop.permute.xlu0 %636 }
 0x57a   :  { %v639_v13 = vsub.f32 %v630_v9, %v637_v12  ;;  %v624_v14 = vpop.permute.xlu1 %623 }
 0x57b   :  { %v626_v15 = vsub.f32 %v613_v11, %v624_v14 }
 0x57c   :  { %649 = vrot.lane.b32.xlu1 %v639_v13, %s1036_s10 }
 0x57d   :  { %645 = vrot.lane.b32.xlu0 %v626_v15, %s1031_s20 }
 0x5ea   :  { %v642_v16 = vpop.permute.xlu1 %641 }
 0x5eb   :  { %v663_v10 = vsel %vm662_vm13, %v1144_v55, %v642_v16 }
 0x5ee   :  { %v650_v18 = vpop.permute.xlu1 %649 }
 0x5ef   :  { %v646_v17 = vpop.permute.xlu0 %645 }
 0x5f0   :  { %v665_v6 = vsel %vm664_vm14, %v663_v10, %v646_v17 }
 0x5f1   :  { %v667_v19 = vsel %vm666_vm15, %v665_v6, %v650_v18 }
 0x5f2   :  { %v669_v20 = vsel %vm668_vm0, %v667_v19, 0.0 }
 0x5f3   :  { %671 = vst [vmem:[#allocation8 + $0x8] sm:$0xff] %v669_v20 }
 0x5f4   :  { %1002 = shalt.err (!%p999_p0)
}
 0x5f5   :  { %s1003_s1 = scalar_lea.hbm %s1190_s4, 256 }
 0x5f6   :  { %p1004_p1 = scmp.ne.s32.totalorder %s1190_s4, %s1003_s1  ;;  %p1007_p2 = scmp.lt.u32.totalorder %s1003_s1, %s1190_s4 }
 0x5f8   :  { %p1009_p3 = pnand %p1007_p2, %p1004_p1 }
 0x5fa   :  { %1012 = shalt.err (!%p1009_p3)
}
 0x5fb   :  { %691 = dma.vmem_to_hbm [thread:$0]  %s689_s0, 256, %s1190_s4, [#allocation9]  }
 0x5fc   :  { %1017 = dma.done.wait [#allocation4], 256  }
 0x5fd   :  { %1018 = vsyncadd [#allocation4], 4294967040 }
 0x5fe   :  { %1019 = dma.done.wait [#allocation9], 256  }
 0x5ff   :  { %1020 = vsyncadd [#allocation9], 4294967040 }
 0x600   :  { %698 = vsyncpa [#allocation3], 1 }
 0x601   :  { %699 = vsyncpa [#allocation6], 1 }
 0x602   :  { %700 = vsyncpa [#allocation4], 1 }
 0x603   :  { %701 = vsyncpa [#allocation9], 1 }

</bundles_post_ra>
